<compile_context>
chip_gen: v7x
topology: tpu7x:2x2x1
jax: 0.10.0
libtpu: 0.0.40
codegen_flags: <defaults>
</compile_context>

<pallas_src>
import functools

import jax
import jax.numpy as jnp
from jax import lax
from jax.experimental import pallas as pl
from jax.experimental.pallas import tpu as pltpu

_LANE = 128
_MAX_TL = 2048               # lane-tile cap
_MAX_TILE_ELEMS = 1 << 20    # ~4 MiB of f32 logits per tile (safe on v5e/v6e/v7x)


def _round_up(x, m):
    return (x + m - 1) // m * m


def _row_align(*dtypes):
    a = 8
    for d in dtypes:
        sz = jnp.dtype(d).itemsize
        if sz == 2:
            a = max(a, 16)
        elif sz == 1:
            a = max(a, 32)
    return a


def _focal_loss_kernel(x_ref, t_ref, w_ref, out_ref, acc_ref, *, gamma,
                       binary_targets, approx_pow, rows, cols,
                       blocks_per_split, need_row_mask, need_col_mask):
    """One (tr, tl) tile of sigmoid focal loss, accumulated over the L grid axis.

    x_ref  : (tr, tl) logits (native dtype, upcast here)
    t_ref  : (tr, tl) one-hot targets (bf16 for hard targets)
    w_ref  : (tr, 1)  per-row class weight (0 on padded rows)
    out_ref: (tr, 128) per-row, per-lane-group weighted partial sums
    acc_ref: (tr, 128) f32 scratch, lane-dense running sums over the L axis
    """
    j = pl.program_id(2)

    @pl.when(j == 0)
    def _init():
        acc_ref[...] = jnp.zeros_like(acc_ref)

    x = x_ref[...].astype(jnp.float32)
    t = t_ref[...].astype(jnp.float32)
    tr, tl = x.shape

    # shared softplus pieces; e = exp(-|x|) is reused by the focal modulator
    e = jnp.exp(-jnp.abs(x))                      # EUP 1
    sp = jnp.maximum(x, 0.0) + jnp.log1p(e)       # softplus(x), EUP 2
    xt = x * t
    bce = sp - xt                                 # BCE with logits

    if binary_targets:
        if approx_pow and float(gamma) == 2.0:
            # focal modulator = sigmoid(-z)^2 with z = x*(2t-1); |z| == |x| for
            # hard targets so e is reused; the exp is replaced by an approx
            # EUP reciprocal + a VALU square (EUP-bound v6e/v7x fast path).
            z = x * (2.0 * t - 1.0)
            pt = jnp.where(z >= 0.0, e, 1.0) * pl.reciprocal(1.0 + e, approx=True)
            mod = pt * pt
        else:
            # exact: log(1 - p_t) = -softplus(x*(2t-1)) = (x - x*t) - softplus(x)
            mod = jnp.exp(gamma * ((x - xt) - sp))    # EUP 3
    else:
        # fallback for soft / label-smoothed targets (2 extra EUP ops)
        z = x * (2.0 * t - 1.0)
        spz = jnp.maximum(z, 0.0) + jnp.log1p(jnp.exp(-jnp.abs(z)))
        mod = jnp.exp(-gamma * spz)

    loss = mod * bce

    # Inputs are streamed unpadded from HBM: mask out-of-range rows/cols of the
    # edge blocks here (select, so unspecified padding can never leak NaN/inf).
    if need_row_mask or need_col_mask:
        ok = None
        if need_row_mask:
            row_start = pl.program_id(1) * tr
            ok = (lax.broadcasted_iota(jnp.int32, (tr, 1), 0) + row_start) < rows
        if need_col_mask:
            col_block = pl.program_id(0) * blocks_per_split + j
            col_start = col_block * tl
            col_ok = (lax.broadcasted_iota(jnp.int32, (1, tl), 1) + col_start) < cols
            ok = col_ok if ok is None else jnp.logical_and(ok, col_ok)
        loss = jnp.where(ok, loss, 0.0)

    # Lane-dense accumulation: fold 128-wide column groups with pure VPU adds
    # (no per-step XLU cross-lane reduce, no narrow masked stores).
    part = loss[:, 0:_LANE]
    for c in range(1, tl // _LANE):
        part = part + loss[:, c * _LANE:(c + 1) * _LANE]
    acc_ref[...] += part

    @pl.when(j == pl.num_programs(2) - 1)
    def _finalize():
        out_ref[...] = acc_ref[...] * w_ref[...]


def focal_loss(y_pred, y, weights, *, gamma=2.0, include_background=True,
               binary_targets=True, approx_pow=False):
    """Pallas-backed equivalent of the PyTorch FocalLoss module forward.

    binary_targets=True assumes hard one-hot {0,1} targets (the module's usage);
    approx_pow=True enables the sigmoid^2 modulator with an approximate EUP
    reciprocal (removes one exp/element; ~1e-3 relative error).
    """
    weights = jnp.asarray(weights, jnp.float32)
    if not include_background:
        y_pred = y_pred[:, 1:]
        y = y[:, 1:]
        weights = weights[1:]

    B, C, H, W = y_pred.shape
    assert weights.shape == (C,), "class weight length must match channels"

    R, L = B * C, H * W
    x2 = y_pred.reshape(R, L)                     # logits in native dtype
    t2 = y.reshape(R, L)
    if binary_targets:
        t2 = t2.astype(jnp.bfloat16)              # {0,1} exact in bf16; fewer HBM bytes

    row_align = _row_align(x2.dtype, t2.dtype)

    # ---- padding-aware tile selection (no jnp.pad of the big inputs) ----------
    Lp = _round_up(L, _LANE)
    n_l = pl.cdiv(Lp, _MAX_TL)
    tl = _round_up(pl.cdiv(Lp, n_l), _LANE)
    n_l = pl.cdiv(Lp, tl)                         # minimal -> last L block never fully OOB

    tr_cap = max(row_align, (_MAX_TILE_ELEMS // tl) // row_align * row_align)
    Rp = _round_up(R, row_align)
    n_r = pl.cdiv(Rp, tr_cap)
    if n_r == 1 and Rp >= 2 * row_align:
        n_r = 2                                   # >=2 parallel row blocks for multi-TC chips
    tr = _round_up(pl.cdiv(Rp, n_r), row_align)
    n_r = pl.cdiv(Rp, tr)

    # if rows cannot be split (tiny B*C), split the L range across cores instead
    n_p = 2 if (n_r == 1 and n_l >= 2) else 1
    n_l_per = pl.cdiv(n_l, n_p)

    need_row_mask = n_r * tr > R
    need_col_mask = n_p * n_l_per * tl > L

    # per-row class weight; only this tiny (R,1) array is padded (zeros on pad rows)
    w2 = jnp.broadcast_to(weights[None, :], (B, C)).reshape(R, 1)
    if n_r * tr > R:
        w2 = jnp.pad(w2, ((0, n_r * tr - R), (0, 0)))

    if n_p == 1:
        data_map = lambda p, i, j: (i, j)
    else:
        # clamp so the (fully masked) overhanging block never requests an OOB DMA
        data_map = lambda p, i, j: (i, jnp.minimum(p * n_l_per + j, n_l - 1))

    bytes_in = (x2.size * x2.dtype.itemsize + t2.size * t2.dtype.itemsize
                + w2.size * w2.dtype.itemsize)
    bytes_out = n_p * n_r * tr * _LANE * 4
    cost = pl.CostEstimate(flops=16 * R * L, transcendentals=3 * R * L,
                           bytes_accessed=bytes_in + bytes_out)

    partials = pl.pallas_call(
        functools.partial(
            _focal_loss_kernel, gamma=float(gamma),
            binary_targets=binary_targets, approx_pow=approx_pow,
            rows=R, cols=L, blocks_per_split=n_l_per,
            need_row_mask=need_row_mask, need_col_mask=need_col_mask),
        out_shape=jax.ShapeDtypeStruct((n_p, n_r * tr, _LANE), jnp.float32),
        grid_spec=pltpu.PrefetchScalarGridSpec(
            num_scalar_prefetch=0,
            grid=(n_p, n_r, n_l_per),             # reduction axis (L) last
            in_specs=[
                pl.BlockSpec((tr, tl), data_map),
                pl.BlockSpec((tr, tl), data_map),
                pl.BlockSpec((tr, 1), lambda p, i, j: (i, 0)),
            ],
            out_specs=pl.BlockSpec((None, tr, _LANE), lambda p, i, j: (p, i, 0)),
            scratch_shapes=[pltpu.VMEM((tr, _LANE), jnp.float32)],
        ),
        compiler_params=pltpu.CompilerParams(
            dimension_semantics=("parallel", "parallel", "arbitrary"),
            vmem_limit_bytes=32 * 1024 * 1024,
        ),
        cost_estimate=cost,
    )(x2, t2, w2)

    # tiny dense epilogue: every element of `partials` is a weighted partial sum
    # (or an exact 0 for padded/masked slots), so a plain contiguous sum suffices.
    return jnp.sum(partials) * (1.0 / float(B * C * H * W))


def _focal_loss_ref(y_pred, y, weights, *, gamma=2.0, include_background=True):
    # pure-JAX reference of the MONAI sigmoid focal loss (for sanity check)
    weights = jnp.asarray(weights, jnp.float32)
    if not include_background:
        y_pred = y_pred[:, 1:]
        y = y[:, 1:]
        weights = weights[1:]
    x = y_pred.astype(jnp.float32)
    t = y.astype(jnp.float32)
    bce = jax.nn.softplus(x) - x * t
    invprobs = -jax.nn.softplus(x * (2.0 * t - 1.0))
    loss = jnp.exp(gamma * invprobs) * bce
    loss = loss * weights[None, :, None, None]
    return jnp.mean(loss)


if __name__ == "__main__":
    key = jax.random.PRNGKey(0)
    k1, k2, k3, k4, k5, k6 = jax.random.split(key, 6)

    # --- case 1: canonical small shape matching the module defaults (C=4) ---
    B, C, H, W = 2, 4, 16, 16
    y_pred = jax.random.normal(k1, (B, C, H, W), dtype=jnp.float32)
    labels = jax.random.randint(k2, (B, H, W), 0, C)
    y = jax.nn.one_hot(labels, C, axis=1, dtype=jnp.float32)
    w = jnp.array([1.0, 1.0, 1.0, 1.0], dtype=jnp.float32)
    out = jax.block_until_ready(focal_loss(y_pred, y, w, gamma=2.0))
    ref = _focal_loss_ref(y_pred, y, w, gamma=2.0)
    assert jnp.allclose(out, ref, rtol=1e-5, atol=1e-6), (out, ref)

    # --- case 2: larger non-dividing rows; multiple row & L blocks, row masking ---
    B, C, H, W = 130, 4, 48, 48
    y_pred2 = jax.random.normal(k3, (B, C, H, W), dtype=jnp.float32)
    labels2 = jax.random.randint(k4, (B, H, W), 0, C)
    y2 = jax.nn.one_hot(labels2, C, axis=1, dtype=jnp.float32)
    w2 = jnp.array([0.5, 1.5, 2.0, 1.0], dtype=jnp.float32)
    out2 = jax.block_until_ready(focal_loss(y_pred2, y2, w2, gamma=2.0))
    ref2 = _focal_loss_ref(y_pred2, y2, w2, gamma=2.0)
    assert jnp.allclose(out2, ref2, rtol=1e-4, atol=1e-6), (out2, ref2)

    # --- case 3: tiny B*C with ragged L -> cross-core L split (leading axis = 2),
    #     clamped overhanging block, and both row and column masking ---
    B, C, H, W = 1, 4, 72, 70
    y_pred3 = jax.random.normal(k5, (B, C, H, W), dtype=jnp.float32)
    labels3 = jax.random.randint(k6, (B, H, W), 0, C)
    y3 = jax.nn.one_hot(labels3, C, axis=1, dtype=jnp.float32)
    w3 = jnp.array([1.0, 2.0, 0.5, 1.5], dtype=jnp.float32)
    out3 = jax.block_until_ready(focal_loss(y_pred3, y3, w3, gamma=2.0))
    ref3 = _focal_loss_ref(y_pred3, y3, w3, gamma=2.0)
    assert jnp.allclose(out3, ref3, rtol=1e-5, atol=1e-6), (out3, ref3)

    # --- case 4: EUP fast path (approx reciprocal); loose tolerance by design ---
    out4 = jax.block_until_ready(
        focal_loss(y_pred2, y2, w2, gamma=2.0, approx_pow=True))
    assert jnp.abs(out4 - ref2) <= 5e-2 * jnp.abs(ref2) + 1e-5, (out4, ref2)

    print("KERNEL_OK")
</pallas_src>

<mosaic_0001>
module attributes {stable_mosaic.version = 11 : i64} {
  func.func @_focal_loss_kernel(%arg0: i32, %arg1: i32, %arg2: i32, %arg3: memref<16x256xf32, #tpu.memory_space<vmem>>, %arg4: memref<16x256xbf16, #tpu.memory_space<vmem>>, %arg5: memref<16x1xf32, #tpu.memory_space<vmem>>, %arg6: memref<1x16x128xf32, #tpu.memory_space<vmem>>, %arg7: memref<16x128xf32, #tpu.memory_space<vmem>>) attributes {dimension_semantics = [#tpu.dimension_semantics<parallel>, #tpu.dimension_semantics<parallel>, #tpu.dimension_semantics<arbitrary>], iteration_bounds = array<i64: 1, 1, 1>, scalar_prefetch = 0 : i64, scratch_operands = 1 : i64, tpu.core_type = #tpu.core_type<tc>, window_params = [{transform_indices = @transform_0, window_bounds = array<i64: 16, 256>}, {transform_indices = @transform_1, window_bounds = array<i64: 16, 256>}, {transform_indices = @transform_2, window_bounds = array<i64: 16, 1>}, {transform_indices = @transform_3, window_bounds = array<i64: 1, 16, 128>}]} {
    %c0_i32 = arith.constant 0 : i32
    %0 = arith.cmpi eq, %arg2, %c0_i32 : i32
    %1 = arith.extui %0 : i1 to i32
    %c0_i32_0 = arith.constant 0 : i32
    %2 = arith.cmpi ne, %1, %c0_i32_0 : i32
    scf.if %2 {
      %cst_13 = arith.constant 0.000000e+00 : f32
      %41 = vector.broadcast %cst_13 : f32 to vector<16x128xf32>
      %c0_14 = arith.constant 0 : index
      %c0_15 = arith.constant 0 : index
      %42 = vector.load %arg7[%c0_14, %c0_15] : memref<16x128xf32, #tpu.memory_space<vmem>>, vector<16x128xf32>
      tpu.vector_store %arg7[%c0_14, %c0_15], %41 {strides = array<i32>} : memref<16x128xf32, #tpu.memory_space<vmem>>, vector<16x128xf32>,
    } else {
    }
    %c0 = arith.constant 0 : index
    %c0_1 = arith.constant 0 : index
    %3 = vector.load %arg3[%c0, %c0_1] : memref<16x256xf32, #tpu.memory_space<vmem>>, vector<16x256xf32>
    %c0_2 = arith.constant 0 : index
    %c0_3 = arith.constant 0 : index
    %4 = vector.load %arg4[%c0_2, %c0_3] : memref<16x256xbf16, #tpu.memory_space<vmem>>, vector<16x256xbf16>
    %5 = arith.extf %4 : vector<16x256xbf16> to vector<16x256xf32>
    %6 = math.absf %3 : vector<16x256xf32>
    %cst = arith.constant 0.000000e+00 : f32
    %7 = vector.broadcast %cst : f32 to vector<16x256xf32>
    %8 = arith.subf %7, %6 : vector<16x256xf32>
    %9 = math.exp %8 : vector<16x256xf32>
    %cst_4 = arith.constant 0.000000e+00 : f32
    %10 = vector.broadcast %cst_4 : f32 to vector<16x256xf32>
    %11 = arith.maximumf %3, %10 : vector<16x256xf32>
    %12 = math.log1p %9 : vector<16x256xf32>
    %13 = arith.addf %11, %12 : vector<16x256xf32>
    %14 = arith.mulf %3, %5 : vector<16x256xf32>
    %15 = arith.subf %13, %14 : vector<16x256xf32>
    %16 = arith.subf %3, %14 : vector<16x256xf32>
    %17 = arith.subf %16, %13 : vector<16x256xf32>
    %cst_5 = arith.constant 2.000000e+00 : f32
    %18 = vector.broadcast %cst_5 : f32 to vector<16x256xf32>
    %19 = arith.mulf %18, %17 : vector<16x256xf32>
    %20 = math.exp %19 : vector<16x256xf32>
    %21 = arith.mulf %20, %15 : vector<16x256xf32>
    %c16_i32 = arith.constant 16 : i32
    %22 = arith.muli %arg1, %c16_i32 : i32
    %23 = tpu.iota {dimensions = array<i32: 0>} : vector<16x1xi32>
    %24 = vector.broadcast %22 : i32 to vector<16x1xi32>
    %25 = arith.addi %23, %24 : vector<16x1xi32>
    %c8_i32 = arith.constant 8 : i32
    %26 = vector.broadcast %c8_i32 : i32 to vector<16x1xi32>
    %27 = arith.cmpi slt, %25, %26 : vector<16x1xi32>
    %cst_6 = arith.constant 0.000000e+00 : f32
    %28 = vector.shape_cast %27 : vector<16x1xi1> to vector<16x1xi1>
    %29 = vector.broadcast %28 : vector<16x1xi1> to vector<16x256xi1>
    %30 = vector.broadcast %cst_6 : f32 to vector<16x256xf32>
    %31 = arith.select %29, %21, %30 : vector<16x256xi1>, vector<16x256xf32>
    %32 = vector.extract_strided_slice %31 {offsets = [0, 0], sizes = [16, 128], strides = [1, 1]} : vector<16x256xf32> to vector<16x128xf32>
    %33 = vector.extract_strided_slice %31 {offsets = [0, 128], sizes = [16, 128], strides = [1, 1]} : vector<16x256xf32> to vector<16x128xf32>
    %34 = arith.addf %32, %33 : vector<16x128xf32>
    %c0_7 = arith.constant 0 : index
    %c0_8 = arith.constant 0 : index
    %35 = vector.load %arg7[%c0_7, %c0_8] : memref<16x128xf32, #tpu.memory_space<vmem>>, vector<16x128xf32>
    %36 = arith.addf %35, %34 : vector<16x128xf32>
    %c0_9 = arith.constant 0 : index
    %c0_10 = arith.constant 0 : index
    %37 = vector.load %arg7[%c0_9, %c0_10] : memref<16x128xf32, #tpu.memory_space<vmem>>, vector<16x128xf32>
    tpu.vector_store %arg7[%c0_9, %c0_10], %36 {strides = array<i32>} : memref<16x128xf32, #tpu.memory_space<vmem>>, vector<16x128xf32>,
    %c0_i32_11 = arith.constant 0 : i32
    %38 = arith.cmpi eq, %arg2, %c0_i32_11 : i32
    %39 = arith.extui %38 : i1 to i32
    %c0_i32_12 = arith.constant 0 : i32
    %40 = arith.cmpi ne, %39, %c0_i32_12 : i32
    scf.if %40 {
      %c0_13 = arith.constant 0 : index
      %c0_14 = arith.constant 0 : index
      %41 = vector.load %arg7[%c0_13, %c0_14] : memref<16x128xf32, #tpu.memory_space<vmem>>, vector<16x128xf32>
      %c0_15 = arith.constant 0 : index
      %c0_16 = arith.constant 0 : index
      %42 = vector.load %arg5[%c0_15, %c0_16] : memref<16x1xf32, #tpu.memory_space<vmem>>, vector<16x1xf32>
      %43 = vector.broadcast %42 : vector<16x1xf32> to vector<16x128xf32>
      %44 = arith.mulf %41, %43 : vector<16x128xf32>
      %c0_17 = arith.constant 0 : index
      %c0_18 = arith.constant 0 : index
      %c0_19 = arith.constant 0 : index
      %45 = vector.load %arg6[%c0_17, %c0_18, %c0_19] : memref<1x16x128xf32, #tpu.memory_space<vmem>>, vector<1x16x128xf32>
      %46 = vector.shape_cast %45 : vector<1x16x128xf32> to vector<16x128xf32>
      %47 = vector.shape_cast %44 : vector<16x128xf32> to vector<1x16x128xf32>
      tpu.vector_store %arg6[%c0_17, %c0_18, %c0_19], %47 {strides = array<i32>} : memref<1x16x128xf32, #tpu.memory_space<vmem>>, vector<1x16x128xf32>,
    } else {
    }
    return
  }
  func.func @transform_0(%arg0: i32, %arg1: i32, %arg2: i32) -> (i32, i32) {
    %c0_i32 = arith.constant 0 : i32
    return %arg1, %arg2 : i32, i32
  }
  func.func @transform_1(%arg0: i32, %arg1: i32, %arg2: i32) -> (i32, i32) {
    %c0_i32 = arith.constant 0 : i32
    return %arg1, %arg2 : i32, i32
  }
  func.func @transform_2(%arg0: i32, %arg1: i32, %arg2: i32) -> (i32, i32) {
    %c0_i32 = arith.constant 0 : i32
    %c0_i32_0 = arith.constant 0 : i32
    return %arg1, %c0_i32 : i32, i32
  }
  func.func @transform_3(%arg0: i32, %arg1: i32, %arg2: i32) -> (i32, i32, i32) {
    %c0_i32 = arith.constant 0 : i32
    %c0_i32_0 = arith.constant 0 : i32
    return %arg0, %arg1, %c0_i32 : i32, i32, i32
  }
}

</mosaic_0001>

<bundles_post_ra>
// kernel: tpu_custom_call.1
= control target key start
LH: loop header
LB: loop body
LE: loop exit
PB: predicated region body
PF: predicated region fallthrough
CT: control target
= control target key end

     0   :  { %8 = vsyncpa [#allocation4], 0  ;;  %s333_s0 = inlined_call_operand.vmem [shape: f32[8,256], index: 0, kind: input, shape index: {}]   ;;  %s334_s1 = inlined_call_operand.hbm [shape: bf16[8,256], index: 1, kind: input, shape index: {}]   ;;  %s335_s2 = inlined_call_operand.vmem [shape: f32[16,1], index: 2, kind: input, shape index: {}]   ;;  %s336_s3 = inlined_call_operand.hbm [shape: f32[1,16,128], index: 3, kind: output, shape index: {}]  }
   0x1   :  { %9 = vsyncpa [#allocation5], 0 }
   0x2   :  { %16 = vsyncadd [#allocation4], 128  ;;  %s266_s12 = smov [#allocation3]   ;;  %s218_s16 = scalar_lea.hbm %s334_s1, 128 }
   0x3   :  { %s17_s13 = sshll.u32 %s266_s12, 4  ;;  %p219_p0 = scmp.ne.s32.totalorder %s334_s1, %s218_s16  ;;  %s18_s13 = int_to_ptr.vmem [resolvable:$true] %s17_s13 }
   0x4   :  { %p222_p1 = scmp.lt.u32.totalorder %s218_s16, %s334_s1 }
   0x6   :  { %p224_p2 = pnand %p222_p1, %p219_p0 }
   0x8   :  { %227 = shalt.err (!%p224_p2)
}
   0x9   :  { %s228_s21 = scalar_lea.vmem %s18_s13, 128  ;;  %s232_s22 = scalar_lea.vmem %s18_s13, 256 }
   0xa   :  { %p229_p3 = scmp.ne.s32.totalorder %s18_s13, %s228_s21  ;;  %p233_p4 = scmp.lt.s32.totalorder %s18_s13, %s18_s13 }
   0xb   :  { %p234_p5 = scmp.lt.s32.totalorder %s232_s22, %s228_s21 }
   0xd   :  { %p235_p6 = por %p234_p5, %p233_p4 }
   0xf   :  { %p236_p7 = pnand %p235_p6, %p229_p3 }
  0x11   :  { %239 = shalt.err (!%p236_p7)
}
  0x12   :  { %s267_s23 = smov 128   ;;  %s268_s24 = smov 8  }
  0x13   :  { %23 = dma.hbm_to_vmem [thread:$0]  %s334_s1, 128, %s18_s13, [#allocation4], %s267_s23, %s267_s23, %s268_s24  }
  0x14   :  { %262 = dma.done.wait [#allocation4], 256  }
  0x15   :  { %263 = vsyncadd [#allocation4], 4294967040  ;;  %v269_v0 = vmov 0   ;;  %v167_v1 = vld [vmem:[%s335_s2] sm:$0xff]  ;;  %v168_v2 = vld [vmem:[%s335_s2 + $0x8] sm:$0xff] }
  0x16   :  { %205 = vset.pattern.permute.xlu0 %v269_v0  ;;  %v35_v3 = vld [vmem:[%s333_s0] sm:$0xff]  ;;  %v36_v4 = vld [vmem:[%s333_s0 + $0x8] sm:$0xff]  ;;  %s270_s0 = smov [#allocation6]  }
  0x17   :  { %171 = vperm.xlu0 %205, %v167_v1   ;;  %v45_v5 = vand.u32 2147483647, %v35_v3  ;;  %v46_v6 = vand.u32 2147483647, %v36_v4  ;;  %v39_v17 = vld [vmem:[#allocation3] sm:$0xff]  ;;  %v61_v30 = vmax.f32 %v35_v3, 0.0 }
  0x18   :  { %v41_v24 = vunpack.c.l.bf16 %v39_v17  ;;  %v42_v25 = vunpack.c.h.bf16 %v39_v17  ;;  %v62_v32 = vmax.f32 %v36_v4, 0.0  ;;  %s188_s2 = sshll.u32 %s270_s0, 4  ;;  %s189_s2 = int_to_ptr.vmem [resolvable:$true] %s188_s2 }
  0x19   :  { %v49_v7 = vsub.f32 0.0, %v45_v5  ;;  %v50_v8 = vsub.f32 0.0, %v46_v6  ;;  %s240_s7 = scalar_lea.vmem %s189_s2, 256  ;;  %p245_p9 = scmp.lt.s32.totalorder %s189_s2, %s189_s2 }
  0x1a   :  { %v105_v31 = vmul.f32 %v41_v24, %v35_v3  ;;  %v106_v34 = vmul.f32 %v42_v25, %v36_v4  ;;  %p241_p8 = scmp.ne.s32.totalorder %s189_s2, %s240_s7  ;;  %p246_p10 = scmp.lt.s32.totalorder %s240_s7, %s240_s7 }
  0x1b   :  { %176 = vperm.xlu0 %205, %v168_v2   ;;  %v53_v9 = vmul.f32 1.442695, %v49_v7  ;;  %v55_v10 = vmul.f32 1.442695, %v50_v8 }
  0x1c   :  { %v113_v37 = vsub.f32 %v35_v3, %v105_v31  ;;  %v114_v39 = vsub.f32 %v36_v4, %v106_v34  ;;  %p247_p11 = por %p246_p10, %p245_p9 }
  0x1d   :  { %206 = vpow2.f32 %v53_v9 }
  0x1e   :  { %208 = vpow2.f32 %v55_v10  ;;  %p248_p12 = pnand %p247_p11, %p241_p8 }
  0x27   :  { %v207_v11 = vpop.eup %206 }
  0x28   :  { %v209_v12 = vpop.eup %208  ;;  %v65_v13 = vadd.f32 1.0, %v207_v11  ;;  %v68_v15 = vmul.f32 -0.5, %v207_v11  ;;  %v71_v20 = vand.u32 2147483647, %v207_v11 }
  0x29   :  { %v74_v14 = vadd.f32 1.0, %v209_v12  ;;  %v77_v16 = vmul.f32 -0.5, %v209_v12  ;;  %v80_v23 = vand.u32 2147483647, %v209_v12 }
  0x2a   :  { %210 = vlog2.f32 %v65_v13  ;;  %v69_v18 = vadd.f32 1.0, %v68_v15  ;;  %vm72_vm0 = vcmp.lt.f32.partialorder %v71_v20, 0.0004427343 }
  0x2b   :  { %212 = vlog2.f32 %v74_v14  ;;  %v78_v21 = vadd.f32 1.0, %v77_v16  ;;  %vm81_vm1 = vcmp.lt.f32.partialorder %v80_v23, 0.0004427343 }
  0x2c   :  { %v70_v27 = vmul.f32 %v207_v11, %v69_v18 }
  0x2d   :  { %v79_v29 = vmul.f32 %v209_v12, %v78_v21 }
  0x34   :  { %v211_v19 = vpop.eup %210 }
  0x35   :  { %v213_v22 = vpop.eup %212  ;;  %v67_v26 = vmul.f32 0.6931472, %v211_v19 }
  0x36   :  { %v76_v28 = vmul.f32 0.6931472, %v213_v22 }
  0x37   :  { %v73_v33 = vsel %vm72_vm0, %v70_v27, %v67_v26 }
  0x38   :  { %v82_v35 = vsel %vm81_vm1, %v79_v29, %v76_v28  ;;  %v101_v36 = vadd.f32 %v73_v33, %v61_v30 }
  0x39   :  { %v102_v38 = vadd.f32 %v82_v35, %v62_v32 }
  0x3a   :  { %v117_v40 = vsub.f32 %v113_v37, %v101_v36  ;;  %v109_v47 = vsub.f32 %v101_v36, %v105_v31 }
  0x3b   :  { %v118_v41 = vsub.f32 %v114_v39, %v102_v38  ;;  %v110_v48 = vsub.f32 %v102_v38, %v106_v34 }
  0x3c   :  { %v121_v42 = vmul.f32 2.0, %v117_v40 }
  0x3d   :  { %v122_v43 = vmul.f32 2.0, %v118_v41 }
  0x3e   :  { %v125_v44 = vmul.f32 1.442695, %v121_v42 }
  0x3f   :  { %v127_v45 = vmul.f32 1.442695, %v122_v43 }
  0x40   :  { %214 = vpow2.f32 %v125_v44 }
  0x41   :  { %216 = vpow2.f32 %v127_v45 }
  0x4a   :  { %v215_v46 = vpop.eup %214 }
  0x4b   :  { %v217_v49 = vpop.eup %216  ;;  %v133_v50 = vmul.f32 %v215_v46, %v109_v47 }
  0x4c   :  { %v134_v51 = vmul.f32 %v217_v49, %v110_v48 }
  0x4e   :  { %v154_v52 = vadd.f32 %v134_v51, %v133_v50 }
  0x96   :  { %v172_v53 = vpop.permute.xlu0 %171 }
  0x97   :  { %v179_v54 = vmul.f32 %v172_v53, %v154_v52 }
  0x99   :  { %181 = vst [vmem:[#allocation6] sm:$0xff] %v179_v54 }
  0x9a   :  { %v177_v55 = vpop.permute.xlu0 %176 }
  0x9b   :  { %v180_v56 = vmul.f32 0.0, %v177_v55 }
  0x9d   :  { %182 = vst [vmem:[#allocation6 + $0x8] sm:$0xff] %v180_v56 }
  0x9e   :  { %251 = shalt.err (!%p248_p12)
}
  0x9f   :  { %s252_s10 = scalar_lea.hbm %s336_s3, 256 }
  0xa0   :  { %p253_p13 = scmp.ne.s32.totalorder %s336_s3, %s252_s10  ;;  %p256_p0 = scmp.lt.u32.totalorder %s252_s10, %s336_s3 }
  0xa2   :  { %p258_p1 = pnand %p256_p0, %p253_p13 }
  0xa4   :  { %261 = shalt.err (!%p258_p1)
}
  0xa5   :  { %194 = dma.vmem_to_hbm [thread:$0]  %s189_s2, 256, %s336_s3, [#allocation5], %s267_s23, %s267_s23, %s268_s24  }
  0xa6   :  { %264 = dma.done.wait [#allocation5], 256  }
  0xa7   :  { %265 = vsyncadd [#allocation5], 4294967040 }
  0xa8   :  { %198 = vsyncpa [#allocation4], 1 }
  0xa9   :  { %199 = vsyncpa [#allocation5], 1 }

</bundles_post_ra>
